<compile_context>
chip_gen: v6e
topology: v6e:2x2x1
jax: 0.10.0
libtpu: 0.0.40
codegen_flags: <defaults>
</compile_context>

<pallas_src>
import functools

import jax
import jax.numpy as jnp
from jax import lax
from jax.experimental import pallas as pl
from jax.experimental.pallas import tpu as pltpu


def _reward_criterion_kernel(logp_ref, mask_ref, reward_ref, out_ref, acc_ref,
                             *, B, T, bb, bt):
    i = pl.program_id(0)          # B-tile index ("parallel")
    j = pl.program_id(1)          # T-tile index ("arbitrary", innermost)
    nt = pl.num_programs(1)

    # Zero the per-B-tile accumulators at the first T step.
    @pl.when(j == 0)
    def _():
        acc_ref[0] = jnp.float32(0.0)
        acc_ref[1] = jnp.float32(0.0)

    # Read tiles; accumulate in f32 regardless of the input dtype.
    logp = logp_ref[...].astype(jnp.float32)       # (bb, bt)
    mask = mask_ref[...].astype(jnp.float32)       # (bb, bt)
    reward = reward_ref[...].astype(jnp.float32)   # (bb, 1)

    # Mask out-of-bounds rows/cols of boundary tiles (tiles need not divide B, T).
    row = lax.broadcasted_iota(jnp.int32, (bb, bt), 0) + i * bb
    col = lax.broadcasted_iota(jnp.int32, (bb, bt), 1) + j * bt
    valid = (row < B) & (col < T)
    logp = jnp.where(valid, logp, 0.0)
    mask = jnp.where(valid, mask, 0.0)
    row_valid = (lax.broadcasted_iota(jnp.int32, (bb, 1), 0) + i * bb) < B
    reward = jnp.where(row_valid, reward, 0.0)

    # One VPU pass + row reduction; reward multiply stays (bb, 1); the negation
    # happens once per B-tile at the very end.
    w = logp * mask                                 # (bb, bt)
    rowsum = jnp.sum(w, axis=1, keepdims=True)      # (bb, 1)
    acc_ref[0] += jnp.sum(reward * rowsum)          # un-negated numerator
    acc_ref[1] += jnp.sum(mask)                     # denominator

    # Emit this B-tile's (num, den) partial as a lane-aligned block.
    @pl.when(j == nt - 1)
    def _():
        num = -acc_ref[0]
        den = acc_ref[1]
        r = lax.broadcasted_iota(jnp.int32, (1, 8, 128), 1)
        c = lax.broadcasted_iota(jnp.int32, (1, 8, 128), 2)
        out_ref[...] = jnp.where((r == 0) & (c == 0), num,
                                 jnp.where((r == 0) & (c == 1), den, 0.0))


def reward_criterion(seq_logprobs, seq_masks, reward,
                     *, block_b=None, block_t=None):
    """Pallas forward of RewardCriterion.

    seq_logprobs: (B, T), seq_masks: (B, T), reward: (B, 1) or (B,).
    Returns a scalar float32 loss.
    """
    B, T = seq_logprobs.shape
    assert seq_masks.shape == (B, T)
    reward = jnp.reshape(reward, (B, 1))
    # TODO(synk): per-token reward of shape (B, T) would need the reward input
    # tiled like seq_logprobs; only per-sequence (B, 1) reward is handled here.

    # Tile choice: biggest lane-aligned tiles that keep the double-buffered
    # footprint small (2 inputs x 2 buffers x <=1 MiB tile @ f32), well inside
    # the scoped-VMEM budget on v5e / v6e / v7x.  Full-extent blocks are used
    # when the array is already small (always legal regardless of alignment).
    if block_b is None:
        block_b = B if B <= 256 else 256        # multiple of 32 when tiled
    if block_t is None:
        block_t = T if T <= 1024 else 1024      # multiple of 128 when tiled
    bb, bt = block_b, block_t
    nb, nt = pl.cdiv(B, bb), pl.cdiv(T, bt)

    def _isz(x):
        return jnp.dtype(x.dtype).itemsize

    cost = pl.CostEstimate(
        flops=4 * B * T,
        transcendentals=0,
        bytes_accessed=(B * T * (_isz(seq_logprobs) + _isz(seq_masks))
                        + B * _isz(reward) + nb * 8 * 128 * 4),
    )

    kernel = functools.partial(_reward_criterion_kernel, B=B, T=T, bb=bb, bt=bt)
    partials = pl.pallas_call(
        kernel,
        out_shape=jax.ShapeDtypeStruct((nb, 8, 128), jnp.float32),
        grid_spec=pltpu.PrefetchScalarGridSpec(
            num_scalar_prefetch=0,
            grid=(nb, nt),
            in_specs=[
                pl.BlockSpec((bb, bt), lambda i, j: (i, j)),
                pl.BlockSpec((bb, bt), lambda i, j: (i, j)),
                pl.BlockSpec((bb, 1), lambda i, j: (i, 0)),
            ],
            out_specs=pl.BlockSpec((1, 8, 128), lambda i, j: (i, 0, 0)),
            scratch_shapes=[pltpu.SMEM((2,), jnp.float32)],
        ),
        compiler_params=pltpu.CompilerParams(
            dimension_semantics=("parallel", "arbitrary"),
            vmem_limit_bytes=32 * 1024 * 1024,
        ),
        cost_estimate=cost,
    )(seq_logprobs, seq_masks, reward)

    num = jnp.sum(partials[:, 0, 0])
    den = jnp.sum(partials[:, 0, 1])
    # NOTE: all-zero mask yields NaN, matching the PyTorch reference semantics.
    return num / den


if __name__ == "__main__":
    key = jax.random.PRNGKey(0)
    k1, k2, k3 = jax.random.split(key, 3)

    def reference(lp, m, r):
        lp = lp.astype(jnp.float32)
        m = m.astype(jnp.float32)
        r = jnp.reshape(r, (lp.shape[0], 1)).astype(jnp.float32)
        return jnp.sum(-lp * m * r) / jnp.sum(m)

    # --- Test 1: small f32 case (B=2, T=8), single full-array block. ---
    B, T = 2, 8
    seq_logprobs = -jax.random.uniform(k1, (B, T), jnp.float32, 0.1, 5.0)
    lengths = jnp.array([6, 4], dtype=jnp.int32)
    seq_masks = (jnp.arange(T)[None, :] < lengths[:, None]).astype(jnp.float32)
    reward = jax.random.normal(k3, (B, 1), jnp.float32)

    loss = jax.block_until_ready(reward_criterion(seq_logprobs, seq_masks, reward))
    ref = reference(seq_logprobs, seq_masks, reward)
    assert jnp.allclose(loss, ref, rtol=1e-5, atol=1e-6), (loss, ref)

    # --- Test 2: non-aligned shape with forced tiling (exercises the grid,
    #     boundary masking and cross-tile accumulation). ---
    B2, T2 = 20, 300
    lp2 = -jax.random.uniform(k1, (B2, T2), jnp.float32, 0.1, 5.0)
    len2 = jax.random.randint(k2, (B2,), 1, T2 + 1)
    m2 = (jnp.arange(T2)[None, :] < len2[:, None]).astype(jnp.float32)
    r2 = jax.random.normal(k3, (B2, 1), jnp.float32)
    loss2 = jax.block_until_ready(
        reward_criterion(lp2, m2, r2, block_b=8, block_t=128))
    ref2 = reference(lp2, m2, r2)
    assert jnp.allclose(loss2, ref2, rtol=1e-4, atol=1e-5), (loss2, ref2)

    # --- Test 3: bf16 inputs read directly (no wrapper up-cast), f32 accumulate. ---
    lp3 = seq_logprobs.astype(jnp.bfloat16)
    m3 = seq_masks.astype(jnp.bfloat16)
    r3 = reward.astype(jnp.bfloat16)
    loss3 = jax.block_until_ready(reward_criterion(lp3, m3, r3))
    ref3 = reference(lp3, m3, r3)
    assert jnp.allclose(loss3, ref3, rtol=2e-2, atol=1e-3), (loss3, ref3)

    print("KERNEL_OK")
</pallas_src>

<mosaic_0001>
module attributes {stable_mosaic.version = 11 : i64} {
  func.func @_reward_criterion_kernel(%arg0: i32, %arg1: i32, %arg2: memref<2x8xf32, #tpu.memory_space<vmem>>, %arg3: memref<2x8xf32, #tpu.memory_space<vmem>>, %arg4: memref<2x1xf32, #tpu.memory_space<vmem>>, %arg5: memref<1x8x128xf32, #tpu.memory_space<vmem>>, %arg6: memref<2xf32, #tpu.memory_space<smem>>) attributes {dimension_semantics = [#tpu.dimension_semantics<parallel>, #tpu.dimension_semantics<arbitrary>], iteration_bounds = array<i64: 1, 1>, scalar_prefetch = 0 : i64, scratch_operands = 1 : i64, tpu.core_type = #tpu.core_type<tc>, window_params = [{transform_indices = @transform_0, window_bounds = array<i64: 2, 8>}, {transform_indices = @transform_1, window_bounds = array<i64: 2, 8>}, {transform_indices = @transform_2, window_bounds = array<i64: 2, 1>}, {transform_indices = @transform_3, window_bounds = array<i64: 1, 8, 128>}]} {
    %c0_i32 = arith.constant 0 : i32
    %0 = arith.cmpi eq, %arg1, %c0_i32 : i32
    %1 = arith.extui %0 : i1 to i32
    %c0_i32_0 = arith.constant 0 : i32
    %2 = arith.cmpi ne, %1, %c0_i32_0 : i32
    scf.if %2 {
      %cst_20 = arith.constant 0.000000e+00 : f32
      %c0_21 = arith.constant 0 : index
      %52 = memref.load %arg6[%c0_21] : memref<2xf32, #tpu.memory_space<smem>>
      memref.store %cst_20, %arg6[%c0_21] : memref<2xf32, #tpu.memory_space<smem>>
      %cst_22 = arith.constant 0.000000e+00 : f32
      %c1_23 = arith.constant 1 : index
      %53 = memref.load %arg6[%c1_23] : memref<2xf32, #tpu.memory_space<smem>>
      memref.store %cst_22, %arg6[%c1_23] : memref<2xf32, #tpu.memory_space<smem>>
    } else {
    }
    %c0 = arith.constant 0 : index
    %c0_1 = arith.constant 0 : index
    %3 = vector.load %arg2[%c0, %c0_1] : memref<2x8xf32, #tpu.memory_space<vmem>>, vector<2x8xf32>
    %c0_2 = arith.constant 0 : index
    %c0_3 = arith.constant 0 : index
    %4 = vector.load %arg3[%c0_2, %c0_3] : memref<2x8xf32, #tpu.memory_space<vmem>>, vector<2x8xf32>
    %c0_4 = arith.constant 0 : index
    %c0_5 = arith.constant 0 : index
    %5 = vector.load %arg4[%c0_4, %c0_5] : memref<2x1xf32, #tpu.memory_space<vmem>>, vector<2x1xf32>
    %6 = tpu.iota {dimensions = array<i32: 0>} : vector<2x8xi32>
    %c2_i32 = arith.constant 2 : i32
    %7 = arith.muli %arg0, %c2_i32 : i32
    %8 = vector.broadcast %7 : i32 to vector<2x8xi32>
    %9 = arith.addi %6, %8 : vector<2x8xi32>
    %10 = tpu.iota {dimensions = array<i32: 1>} : vector<2x8xi32>
    %c8_i32 = arith.constant 8 : i32
    %11 = arith.muli %arg1, %c8_i32 : i32
    %12 = vector.broadcast %11 : i32 to vector<2x8xi32>
    %13 = arith.addi %10, %12 : vector<2x8xi32>
    %c2_i32_6 = arith.constant 2 : i32
    %14 = vector.broadcast %c2_i32_6 : i32 to vector<2x8xi32>
    %15 = arith.cmpi slt, %9, %14 : vector<2x8xi32>
    %c8_i32_7 = arith.constant 8 : i32
    %16 = vector.broadcast %c8_i32_7 : i32 to vector<2x8xi32>
    %17 = arith.cmpi slt, %13, %16 : vector<2x8xi32>
    %18 = arith.andi %15, %17 : vector<2x8xi1>
    %cst = arith.constant 0.000000e+00 : f32
    %19 = vector.broadcast %cst : f32 to vector<2x8xf32>
    %20 = arith.select %18, %3, %19 : vector<2x8xi1>, vector<2x8xf32>
    %cst_8 = arith.constant 0.000000e+00 : f32
    %21 = vector.broadcast %cst_8 : f32 to vector<2x8xf32>
    %22 = arith.select %18, %4, %21 : vector<2x8xi1>, vector<2x8xf32>
    %23 = tpu.iota {dimensions = array<i32: 0>} : vector<2x1xi32>
    %c2_i32_9 = arith.constant 2 : i32
    %24 = arith.muli %arg0, %c2_i32_9 : i32
    %25 = vector.broadcast %24 : i32 to vector<2x1xi32>
    %26 = arith.addi %23, %25 : vector<2x1xi32>
    %c2_i32_10 = arith.constant 2 : i32
    %27 = vector.broadcast %c2_i32_10 : i32 to vector<2x1xi32>
    %28 = arith.cmpi slt, %26, %27 : vector<2x1xi32>
    %cst_11 = arith.constant 0.000000e+00 : f32
    %29 = vector.broadcast %cst_11 : f32 to vector<2x1xf32>
    %30 = arith.select %28, %5, %29 : vector<2x1xi1>, vector<2x1xf32>
    %31 = arith.mulf %20, %22 : vector<2x8xf32>
    %cst_12 = arith.constant dense<0.000000e+00> : vector<2xf32>
    %32 = vector.multi_reduction <add>, %31, %cst_12 [1] : vector<2x8xf32> to vector<2xf32>
    %33 = vector.shape_cast %32 : vector<2xf32> to vector<2x1xf32>
    %c0_13 = arith.constant 0 : index
    %34 = memref.load %arg6[%c0_13] : memref<2xf32, #tpu.memory_space<smem>>
    %35 = arith.mulf %30, %33 : vector<2x1xf32>
    %36 = vector.shape_cast %35 : vector<2x1xf32> to vector<1x2x1xf32>
    %cst_14 = arith.constant dense<0.000000e+00> : vector<1xf32>
    %37 = vector.multi_reduction <add>, %36, %cst_14 [1, 2] : vector<1x2x1xf32> to vector<1xf32>
    %38 = vector.shape_cast %37 : vector<1xf32> to vector<1x1x1xf32>
    %39 = vector.extract %38[0, 0, 0] : f32 from vector<1x1x1xf32>
    %40 = arith.addf %34, %39 : f32
    %c0_15 = arith.constant 0 : index
    %41 = memref.load %arg6[%c0_15] : memref<2xf32, #tpu.memory_space<smem>>
    memref.store %40, %arg6[%c0_15] : memref<2xf32, #tpu.memory_space<smem>>
    %c1 = arith.constant 1 : index
    %42 = memref.load %arg6[%c1] : memref<2xf32, #tpu.memory_space<smem>>
    %43 = vector.shape_cast %22 : vector<2x8xf32> to vector<1x2x8xf32>
    %cst_16 = arith.constant dense<0.000000e+00> : vector<1xf32>
    %44 = vector.multi_reduction <add>, %43, %cst_16 [1, 2] : vector<1x2x8xf32> to vector<1xf32>
    %45 = vector.shape_cast %44 : vector<1xf32> to vector<1x1x1xf32>
    %46 = vector.extract %45[0, 0, 0] : f32 from vector<1x1x1xf32>
    %47 = arith.addf %42, %46 : f32
    %c1_17 = arith.constant 1 : index
    %48 = memref.load %arg6[%c1_17] : memref<2xf32, #tpu.memory_space<smem>>
    memref.store %47, %arg6[%c1_17] : memref<2xf32, #tpu.memory_space<smem>>
    %c0_i32_18 = arith.constant 0 : i32
    %49 = arith.cmpi eq, %arg1, %c0_i32_18 : i32
    %50 = arith.extui %49 : i1 to i32
    %c0_i32_19 = arith.constant 0 : i32
    %51 = arith.cmpi ne, %50, %c0_i32_19 : i32
    scf.if %51 {
      %c0_20 = arith.constant 0 : index
      %52 = memref.load %arg6[%c0_20] : memref<2xf32, #tpu.memory_space<smem>>
      %cst_21 = arith.constant 0.000000e+00 : f32
      %53 = arith.subf %cst_21, %52 : f32
      %c1_22 = arith.constant 1 : index
      %54 = memref.load %arg6[%c1_22] : memref<2xf32, #tpu.memory_space<smem>>
      %55 = tpu.iota {dimensions = array<i32: 1>} : vector<1x8x128xi32>
      %56 = tpu.iota {dimensions = array<i32: 2>} : vector<1x8x128xi32>
      %c0_i32_23 = arith.constant 0 : i32
      %57 = vector.broadcast %c0_i32_23 : i32 to vector<1x8x128xi32>
      %58 = arith.cmpi eq, %55, %57 : vector<1x8x128xi32>
      %c0_i32_24 = arith.constant 0 : i32
      %59 = vector.broadcast %c0_i32_24 : i32 to vector<1x8x128xi32>
      %60 = arith.cmpi eq, %56, %59 : vector<1x8x128xi32>
      %61 = arith.andi %58, %60 : vector<1x8x128xi1>
      %c0_i32_25 = arith.constant 0 : i32
      %62 = vector.broadcast %c0_i32_25 : i32 to vector<1x8x128xi32>
      %63 = arith.cmpi eq, %55, %62 : vector<1x8x128xi32>
      %c1_i32 = arith.constant 1 : i32
      %64 = vector.broadcast %c1_i32 : i32 to vector<1x8x128xi32>
      %65 = arith.cmpi eq, %56, %64 : vector<1x8x128xi32>
      %66 = arith.andi %63, %65 : vector<1x8x128xi1>
      %cst_26 = arith.constant 0.000000e+00 : f32
      %67 = vector.broadcast %54 : f32 to vector<1x8x128xf32>
      %68 = vector.broadcast %cst_26 : f32 to vector<1x8x128xf32>
      %69 = arith.select %66, %67, %68 : vector<1x8x128xi1>, vector<1x8x128xf32>
      %70 = vector.broadcast %53 : f32 to vector<1x8x128xf32>
      %71 = arith.select %61, %70, %69 : vector<1x8x128xi1>, vector<1x8x128xf32>
      %c0_27 = arith.constant 0 : index
      %c0_28 = arith.constant 0 : index
      %c0_29 = arith.constant 0 : index
      %72 = vector.load %arg5[%c0_27, %c0_28, %c0_29] : memref<1x8x128xf32, #tpu.memory_space<vmem>>, vector<1x8x128xf32>
      tpu.vector_store %arg5[%c0_27, %c0_28, %c0_29], %71 {strides = array<i32>} : memref<1x8x128xf32, #tpu.memory_space<vmem>>, vector<1x8x128xf32>,
    } else {
    }
    return
  }
  func.func @transform_0(%arg0: i32, %arg1: i32) -> (i32, i32) {
    %c0_i32 = arith.constant 0 : i32
    return %arg0, %arg1 : i32, i32
  }
  func.func @transform_1(%arg0: i32, %arg1: i32) -> (i32, i32) {
    %c0_i32 = arith.constant 0 : i32
    return %arg0, %arg1 : i32, i32
  }
  func.func @transform_2(%arg0: i32, %arg1: i32) -> (i32, i32) {
    %c0_i32 = arith.constant 0 : i32
    %c0_i32_0 = arith.constant 0 : i32
    return %arg0, %c0_i32 : i32, i32
  }
  func.func @transform_3(%arg0: i32, %arg1: i32) -> (i32, i32, i32) {
    %c0_i32 = arith.constant 0 : i32
    %c0_i32_0 = arith.constant 0 : i32
    %c0_i32_1 = arith.constant 0 : i32
    return %arg0, %c0_i32, %c0_i32_0 : i32, i32, i32
  }
}

</mosaic_0001>

<bundles_post_ra>
// kernel: tpu_custom_call.1
= control target key start
LH: loop header
LB: loop body
LE: loop exit
PB: predicated region body
PF: predicated region fallthrough
CT: control target
= control target key end

     0   :  { %v26_v0 = vlaneseq  ;;  %s169_s0 = inlined_call_operand.vmem [shape: f32[2,8], index: 0, kind: input, shape index: {}]   ;;  %s170_s1 = inlined_call_operand.vmem [shape: f32[2,8], index: 1, kind: input, shape index: {}]   ;;  %s171_s2 = inlined_call_operand.vmem [shape: f32[2,1], index: 2, kind: input, shape index: {}]   ;;  %s172_s3 = inlined_call_operand.hbm [shape: f32[1,8,128], index: 3, kind: output, shape index: {}]  }
   0x1   :  { %8 = vsyncpa [#allocation4], 0  ;;  %v23_v3 = vld [vmem:[%s169_s0] sm:$0x3]  ;;  %vm43_vm3 = vcmask 58368   ;;  %vm49_vm4 = vcmask 1024  }
   0x2   :  { %v27_v1 = vshrl.u32 %v26_v0, 7  ;;  %v32_v2 = vand.u32 127, %v26_v0  ;;  %v24_v4 = vld [vmem:[%s170_s1] sm:$0x3]  ;;  %s136_s1 = smov [#allocation3]  }
   0x3   :  { %v25_v10 = vld [vmem:[%s171_s2] sm:$0x3]  ;;  %s99_s2 = sshll.u32 %s136_s1, 4  ;;  %s100_s2 = int_to_ptr.vmem [resolvable:$true] %s99_s2 }
   0x4   :  { %vm36_vm0 = vcmp.lt.s32.totalorder %v27_v1, 2  ;;  %vm37_vm1 = vcmp.lt.s32.totalorder %v32_v2, 8  ;;  %vm83_vm5 = vcmp.eq.s32.totalorder %v27_v1, 0  ;;  %vm86_vm6 = vcmp.eq.s32.totalorder %v32_v2, 1  ;;  %s114_s20 = scalar_lea.vmem %s100_s2, 128  ;;  %p119_p1 = scmp.lt.s32.totalorder %s100_s2, %s100_s2 }
   0x5   :  { %vm38_vm2 = vmand %vm36_vm0, %vm37_vm1  ;;  %v41_v11 = vsel %vm36_vm0, %v25_v10, 0.0  ;;  %vm84_vm7 = vcmp.eq.s32.totalorder %v32_v2, 0  ;;  %p115_p0 = scmp.ne.s32.totalorder %s100_s2, %s114_s20  ;;  %p120_p2 = scmp.lt.s32.totalorder %s114_s20, %s114_s20 }
   0x6   :  { %v39_v5 = vsel %vm38_vm2, %v23_v3, 0.0  ;;  %v40_v6 = vsel %vm38_vm2, %v24_v4, 0.0  ;;  %vm87_vm8 = vmand %vm83_vm5, %vm86_vm6 }
   0x7   :  { %v42_v7 = vmul.f32 %v40_v6, %v39_v5  ;;  %v64_v8 = vsel %vm43_vm3, %v40_v6, 0.0  ;;  %vm85_vm9 = vmand %vm83_vm5, %vm84_vm7  ;;  %p121_p3 = por %p120_p2, %p119_p1 }
   0x8   :  { %65 = vadd.xlane.f32.xlu1 %v64_v8 }
   0x9   :  { %v44_v9 = vsel %vm43_vm3, %v42_v7, 0.0  ;;  %p122_p4 = pnand %p121_p3, %p115_p0 }
   0xa   :  { %45 = vadd.xlane.f32.xlu0 %v44_v9 }
  0x91   :  { %v66_v15 = vpop.xlane.xlu1 %65 }
  0x92   :  { %v67_v16 = vrot.slane %v66_v15, 4 }
  0x93   :  { %v46_v12 = vpop.xlane.xlu0 %45 }
  0x94   :  { %v48_v13 = vmul.f32 %v46_v12, %v41_v11  ;;  %v68_v17 = vadd.f32 %v67_v16, %v66_v15 }
  0x96   :  { %v50_v14 = vsel %vm49_vm4, %v48_v13, 0.0  ;;  %v69_v18 = vrot.slane %v68_v17, 2 }
  0x97   :  { %51 = vadd.xlane.f32.xlu0 %v50_v14 }
  0x98   :  { %v70_v22 = vadd.f32 %v69_v18, %v68_v17 }
  0x9a   :  { %v71_v25 = vrot.slane %v70_v22, 1 }
  0x9c   :  { %v72_v28 = vadd.f32 %v71_v25, %v70_v22 }
 0x120   :  { %v52_v19 = vpop.xlane.xlu0 %51 }
 0x121   :  { %v53_v20 = vrot.slane %v52_v19, 4 }
 0x123   :  { %v54_v21 = vadd.f32 %v53_v20, %v52_v19 }
 0x125   :  { %v55_v23 = vrot.slane %v54_v21, 2 }
 0x127   :  { %v56_v24 = vadd.f32 %v55_v23, %v54_v21 }
 0x129   :  { %v57_v26 = vrot.slane %v56_v24, 1 }
 0x12b   :  { %v58_v27 = vadd.f32 %v57_v26, %v56_v24 }
 0x12d   :  { %109 = vpush %v58_v27 }
 0x12e   :  { %111 = vpush %v72_v28 }
 0x15e   :  { %s110_s0 = spop %109 }
 0x15f   :  { %s81_s18 = ssub.f32 0.0, %s110_s0  ;;  %s112_s19 = spop %111 }
 0x160   :  { %v88_v29 = vstv %s112_s19 }
 0x161   :  { %v90_v30 = vstv %s81_s18  ;;  %v89_v31 = vsel %vm87_vm8, %v88_v29, 0.0 }
 0x162   :  { %v91_v32 = vsel %vm85_vm9, %v90_v30, %v89_v31 }
 0x163   :  { %92 = vst [vmem:[#allocation3] sm:$0xff] %v91_v32 }
 0x164   :  { %125 = shalt.err (!%p122_p4)
}
 0x165   :  { %102 = dma.vmem_to_hbm [thread:$0]  %s100_s2, 128, %s172_s3, [#allocation4]  }
 0x166   :  { %134 = dma.done.wait [#allocation4], 128  }
 0x167   :  { %135 = vsyncadd [#allocation4], 4294967168 }
 0x168   :  { %106 = vsyncpa [#allocation4], 1 }

</bundles_post_ra>
